<compile_context>
chip_gen: v7x
topology: tpu7x:2x2x1
jax: 0.10.0
libtpu: 0.0.40
codegen_flags: <defaults>
</compile_context>

<pallas_src>
import functools

import jax
import jax.numpy as jnp
from jax.experimental import pallas as pl
from jax.experimental.pallas import tpu as pltpu

HIDDEN = 512
NUM_ACTIONS = 7


def _round_up(x, m):
    return ((x + m - 1) // m) * m


def _is_v7x():
    try:
        kind = jax.devices()[0].device_kind.lower()
    except Exception:
        return False
    return "v7" in kind


def default_config():
    """Generation-dependent tiling (perf review):
      * v7x: 2 TensorCores / 3.2 TB/s HBM / 64 MiB VMEM -> split H into nh=2 blocks
        (each TC streams half of w1) and use tk=16384 so the ~0.35 us per-step cost
        is <~15% of the per-step w1 DMA.
      * v5e/v6e: single TensorCore -> nh=1 (an h split only doubles grid steps and
        re-streams x) with tk=8192.
    """
    if _is_v7x():
        return {"nh": 2, "tk": 16384}
    return {"nh": 1, "tk": 8192}


def _dqn_kernel(x_ref, w1_ref, b1_ref, s_ref, w2_ref, out_ref, acc_ref):
    """Grid = (nh, nk). Axis 0: hidden-dim block (parallel; megacore sharding on
    v7x). Axis 1: K reduction (arbitrary, last -> accumulator stays resident).

    w1 arrives as int8; it is dequantized to bf16 per tile (VPU work hides under
    the w1 DMA) and its per-column scale is folded into the f32 epilogue. At the
    last K step: relu(acc * scale + b1) @ w2 -> partial fc2 output for this block.
    """
    k = pl.program_id(1)

    # fc1 partial: bf16 MXU matmul with f32 accumulation.
    contrib = jnp.dot(
        x_ref[...],
        w1_ref[...].astype(jnp.bfloat16),  # int8 -> bf16 dequant (unscaled)
        preferred_element_type=jnp.float32,
    )

    @pl.when(k == 0)
    def _():
        acc_ref[...] = contrib             # first K step writes (no zero-fill pass)

    @pl.when(k != 0)
    def _():
        acc_ref[...] += contrib

    @pl.when(k == pl.num_programs(1) - 1)
    def _():
        # Fold the int8 per-column scale in f32, add bias, ReLU, then fc2 (f32).
        h = jnp.maximum(acc_ref[...] * s_ref[...] + b1_ref[...], 0.0)
        out_ref[...] = jnp.dot(
            h, w2_ref[...], preferred_element_type=jnp.float32
        )[None, :, :].astype(out_ref.dtype)


def prepare_params(w1, b1, w2, b2, *, tk=None):
    """One-time (NON-jitted) prep — do not call per step.

    Pads K to a multiple of tk, pads the action dim to 128 lanes, and quantizes
    the big streamed weight w1 to int8 with one symmetric scale per hidden column
    (scale is applied inside the kernel's f32 epilogue). Zero padding is exact.

    NOTE (footgun from review): the tk used here must match the tk passed to
    dqn_forward — only divisibility is asserted there.
    """
    if tk is None:
        tk = default_config()["tk"]
    K, H = w1.shape
    A = w2.shape[1]
    Kp = _round_up(K, tk)
    Ap = _round_up(max(A, 128), 128)

    w1f = jnp.asarray(w1, jnp.float32)
    maxabs = jnp.max(jnp.abs(w1f), axis=0)                        # (H,)
    scale = jnp.where(maxabs > 0, maxabs / 127.0, 1.0)
    w1q = jnp.clip(jnp.round(w1f / scale), -127.0, 127.0).astype(jnp.int8)
    w1q = jnp.pad(w1q, ((0, Kp - K), (0, 0)))                     # int8 zeros: exact

    b1r = jnp.asarray(b1, jnp.float32).reshape(1, H)
    s_r = scale.astype(jnp.float32).reshape(1, H)
    w2p = jnp.pad(jnp.asarray(w2, jnp.float32), ((0, 0), (0, Ap - A)))
    b2r = jnp.asarray(b2, jnp.float32)
    return w1q, b1r, s_r, w2p, b2r


@functools.partial(jax.jit, static_argnames=("tk", "nh"))
def dqn_forward(x, w1q, b1r, s_r, w2p, b2, *, tk, nh):
    """x: (B, ...) f32 (flattened like torch's x.view(B, -1)).
    w1q: (Kp, 512) int8 (pre-padded), b1r/s_r: (1, 512) f32, w2p: (512, Ap) f32
    (action dim pre-padded to 128), b2: (A,) f32."""
    B = x.shape[0]
    xf = x.reshape(B, -1)                  # == torch x.view(x.size(0), -1)
    K = xf.shape[1]
    Kp, H = w1q.shape
    Ap = w2p.shape[1]
    A = b2.shape[0]
    assert Kp % tk == 0 and Kp >= K, (Kp, K, tk)   # tk must match prepare_params
    assert H % nh == 0, (H, nh)
    Hh = H // nh
    nk = Kp // tk
    Bp = _round_up(max(B, 16), 16)         # full bf16 (16,128) packed tile

    # Only the activations are padded per call (cheap: B rows; pad+cast fuses).
    # TODO(synk): handle the K tail in-kernel (mask last tile) to avoid this
    # (Bp, Kp) re-materialization entirely (~2-5% of traffic at full K).
    xf_p = jnp.pad(xf, ((0, Bp - B), (0, Kp - K))).astype(jnp.bfloat16)

    # Usage-derived VMEM limit (perf review): ~2x margin over the actual buffers,
    # capped so the 64 MiB v7x part keeps headroom for compiler-internal scratch.
    usage = (
        2 * Bp * tk * 2            # x, double buffered, bf16
        + 2 * tk * Hh              # w1 int8, double buffered
        + tk * Hh * 2              # bf16 dequant temp
        + 2 * Hh * Ap * 4          # w2 block
        + Bp * Hh * 4              # f32 accumulator
        + 4 * Bp * Ap * 4          # outputs
        + (1 << 20)                # bias/scale + slack
    )
    cap = 48 * 1024 * 1024 if _is_v7x() else 100 * 1024 * 1024
    vmem_limit = int(max(32 * 1024 * 1024, min(2 * usage, cap)))

    cost = pl.CostEstimate(
        flops=2 * Bp * Kp * H + 2 * Bp * H * Ap,
        transcendentals=0,
        bytes_accessed=(
            Kp * H                      # int8 w1 stream (dominant)
            + nh * Bp * Kp * 2          # x re-read per h block (bf16)
            + H * Ap * 4 + nh * Bp * Ap * 4 + 2 * H * 4
        ),
    )

    partials = pl.pallas_call(
        _dqn_kernel,
        out_shape=jax.ShapeDtypeStruct((nh, Bp, Ap), jnp.float32),
        grid_spec=pltpu.PrefetchScalarGridSpec(
            num_scalar_prefetch=0,
            grid=(nh, nk),
            in_specs=[
                pl.BlockSpec((Bp, tk), lambda h, k: (0, k)),    # x tile along K
                pl.BlockSpec((tk, Hh), lambda h, k: (k, h)),    # int8 w1 (K, H-block)
                pl.BlockSpec((1, Hh), lambda h, k: (0, h)),     # b1 H-block (resident)
                pl.BlockSpec((1, Hh), lambda h, k: (0, h)),     # int8 scale H-block
                pl.BlockSpec((Hh, Ap), lambda h, k: (h, 0)),    # w2 H-block (resident)
            ],
            out_specs=pl.BlockSpec((1, Bp, Ap), lambda h, k: (h, 0, 0)),
            scratch_shapes=[pltpu.VMEM((Bp, Hh), jnp.float32)],  # fc1 accumulator
        ),
        compiler_params=pltpu.CompilerParams(
            # The h axis is intended to shard across the two v7x TensorCores; on
            # v5e/v6e nh=1 so it is trivial.
            # TODO(synk): if a v7x Mosaic trace shows both h blocks on one core,
            # switch this axis to pltpu.CORE_PARALLEL (or pl.core_map) so each TC
            # streams exactly half of w1.
            dimension_semantics=("parallel", "arbitrary"),
            vmem_limit_bytes=vmem_limit,
        ),
        cost_estimate=cost,
    )(xf_p, w1q, b1r, s_r, w2p)

    # Sum the nh partial fc2 results (tiny), crop padding, add fc2 bias once.
    return jnp.sum(partials, axis=0)[:B, :A] + b2


def init_params(key, in_features, hidden=HIDDEN, num_actions=NUM_ACTIONS):
    """Deterministic init mirroring torch.nn.Linear default (U(-1/sqrt(fan_in), ...)).
    Weights are stored (in, out) so forward is y = x @ W + b."""
    k1, k2, k3, k4 = jax.random.split(key, 4)
    bound1 = 1.0 / jnp.sqrt(in_features)
    bound2 = 1.0 / jnp.sqrt(hidden)
    w1 = jax.random.uniform(k1, (in_features, hidden), jnp.float32, -bound1, bound1)
    b1 = jax.random.uniform(k2, (hidden,), jnp.float32, -bound1, bound1)
    w2 = jax.random.uniform(k3, (hidden, num_actions), jnp.float32, -bound2, bound2)
    b2 = jax.random.uniform(k4, (num_actions,), jnp.float32, -bound2, bound2)
    return w1, b1, w2, b2


if __name__ == "__main__":
    key = jax.random.PRNGKey(0)
    kx, kp = jax.random.split(key)

    # Small demo shapes: batch=2, channels=4, spatial=16x16 -> K = 1024 flattened
    # features (the original module uses K = 415233; same kernel with the
    # generation-dependent default_config() tile sizes there).
    B, C, Himg, Wimg = 2, 4, 16, 16
    x = jax.random.normal(kx, (B, C, Himg, Wimg), jnp.float32)

    in_features = C * Himg * Wimg
    w1, b1, w2, b2 = init_params(kp, in_features)

    cfg = default_config()
    TK = 256           # small K tile for the demo so the reduction loop has >1 step
    NH = cfg["nh"]     # generation-dependent: 1 on v5e/v6e, 2 on v7x

    w1q, b1r, s_r, w2p, b2r = prepare_params(w1, b1, w2, b2, tk=TK)
    out = dqn_forward(x, w1q, b1r, s_r, w2p, b2r, tk=TK, nh=NH)
    out = jax.block_until_ready(out)

    # Pure-JAX reference matching the kernel's numerics (int8 w1 + bf16 x stream,
    # f32 accumulation, per-column scale folded in before bias/ReLU).
    xf_bf = x.reshape(B, -1).astype(jnp.bfloat16)
    w1_deq = w1q[:in_features].astype(jnp.bfloat16)
    acc = jnp.dot(xf_bf, w1_deq, preferred_element_type=jnp.float32)
    h_ref = jnp.maximum(acc * s_r + b1r, 0.0)
    ref = jnp.dot(h_ref, w2, preferred_element_type=jnp.float32) + b2

    assert out.shape == (B, NUM_ACTIONS), out.shape
    assert jnp.allclose(out, ref, atol=1e-2, rtol=1e-2), float(
        jnp.max(jnp.abs(out - ref))
    )

    print("KERNEL_OK")
</pallas_src>

<mosaic_0001>
module attributes {stable_mosaic.version = 11 : i64} {
  func.func @_dqn_kernel(%arg0: i32, %arg1: i32, %arg2: memref<16x256xbf16, #tpu.memory_space<vmem>>, %arg3: memref<256x512xi8, #tpu.memory_space<vmem>>, %arg4: memref<1x512xf32, #tpu.memory_space<vmem>>, %arg5: memref<1x512xf32, #tpu.memory_space<vmem>>, %arg6: memref<512x128xf32, #tpu.memory_space<vmem>>, %arg7: memref<1x16x128xf32, #tpu.memory_space<vmem>>, %arg8: memref<16x512xf32, #tpu.memory_space<vmem>>) attributes {dimension_semantics = [#tpu.dimension_semantics<parallel>, #tpu.dimension_semantics<arbitrary>], iteration_bounds = array<i64: 1, 4>, scalar_prefetch = 0 : i64, scratch_operands = 1 : i64, tpu.core_type = #tpu.core_type<tc>, window_params = [{transform_indices = @transform_0, window_bounds = array<i64: 16, 256>}, {transform_indices = @transform_1, window_bounds = array<i64: 256, 512>}, {transform_indices = @transform_2, window_bounds = array<i64: 1, 512>}, {transform_indices = @transform_3, window_bounds = array<i64: 1, 512>}, {transform_indices = @transform_4, window_bounds = array<i64: 512, 128>}, {transform_indices = @transform_5, window_bounds = array<i64: 1, 16, 128>}]} {
    %c0 = arith.constant 0 : index
    %c0_0 = arith.constant 0 : index
    %0 = vector.load %arg2[%c0, %c0_0] : memref<16x256xbf16, #tpu.memory_space<vmem>>, vector<16x256xbf16>
    %c0_1 = arith.constant 0 : index
    %c0_2 = arith.constant 0 : index
    %1 = vector.load %arg3[%c0_1, %c0_2] : memref<256x512xi8, #tpu.memory_space<vmem>>, vector<256x512xi8>
    %2 = arith.sitofp %1 : vector<256x512xi8> to vector<256x512xbf16>
    %cst = arith.constant dense<0.000000e+00> : vector<16x512xf32>
    %3 = tpu.matmul %0, %2, %cst {dimension_numbers = #tpu.dot_dimension_numbers<[1], [0], [0], [1], [0, 0, 1, 1], [], []>} : vector<16x256xbf16>, vector<256x512xbf16>, vector<16x512xf32> -> vector<16x512xf32>
    %c0_i32 = arith.constant 0 : i32
    %4 = arith.cmpi eq, %arg1, %c0_i32 : i32
    %5 = arith.extui %4 : i1 to i32
    %c0_i32_3 = arith.constant 0 : i32
    %6 = arith.cmpi ne, %5, %c0_i32_3 : i32
    scf.if %6 {
      %c0_7 = arith.constant 0 : index
      %c0_8 = arith.constant 0 : index
      %13 = vector.load %arg8[%c0_7, %c0_8] : memref<16x512xf32, #tpu.memory_space<vmem>>, vector<16x512xf32>
      tpu.vector_store %arg8[%c0_7, %c0_8], %3 {strides = array<i32>} : memref<16x512xf32, #tpu.memory_space<vmem>>, vector<16x512xf32>,
    } else {
    }
    %c0_i32_4 = arith.constant 0 : i32
    %7 = arith.cmpi ne, %arg1, %c0_i32_4 : i32
    %8 = arith.extui %7 : i1 to i32
    %c0_i32_5 = arith.constant 0 : i32
    %9 = arith.cmpi ne, %8, %c0_i32_5 : i32
    scf.if %9 {
      %c0_7 = arith.constant 0 : index
      %c0_8 = arith.constant 0 : index
      %13 = vector.load %arg8[%c0_7, %c0_8] : memref<16x512xf32, #tpu.memory_space<vmem>>, vector<16x512xf32>
      %14 = arith.addf %13, %3 : vector<16x512xf32>
      %c0_9 = arith.constant 0 : index
      %c0_10 = arith.constant 0 : index
      %15 = vector.load %arg8[%c0_9, %c0_10] : memref<16x512xf32, #tpu.memory_space<vmem>>, vector<16x512xf32>
      tpu.vector_store %arg8[%c0_9, %c0_10], %14 {strides = array<i32>} : memref<16x512xf32, #tpu.memory_space<vmem>>, vector<16x512xf32>,
    } else {
    }
    %c3_i32 = arith.constant 3 : i32
    %10 = arith.cmpi eq, %arg1, %c3_i32 : i32
    %11 = arith.extui %10 : i1 to i32
    %c0_i32_6 = arith.constant 0 : i32
    %12 = arith.cmpi ne, %11, %c0_i32_6 : i32
    scf.if %12 {
      %c0_7 = arith.constant 0 : index
      %c0_8 = arith.constant 0 : index
      %13 = vector.load %arg8[%c0_7, %c0_8] : memref<16x512xf32, #tpu.memory_space<vmem>>, vector<16x512xf32>
      %c0_9 = arith.constant 0 : index
      %c0_10 = arith.constant 0 : index
      %14 = vector.load %arg5[%c0_9, %c0_10] : memref<1x512xf32, #tpu.memory_space<vmem>>, vector<1x512xf32>
      %15 = vector.broadcast %14 : vector<1x512xf32> to vector<16x512xf32>
      %16 = arith.mulf %13, %15 : vector<16x512xf32>
      %c0_11 = arith.constant 0 : index
      %c0_12 = arith.constant 0 : index
      %17 = vector.load %arg4[%c0_11, %c0_12] : memref<1x512xf32, #tpu.memory_space<vmem>>, vector<1x512xf32>
      %18 = vector.broadcast %17 : vector<1x512xf32> to vector<16x512xf32>
      %19 = arith.addf %16, %18 : vector<16x512xf32>
      %cst_13 = arith.constant 0.000000e+00 : f32
      %20 = vector.broadcast %cst_13 : f32 to vector<16x512xf32>
      %21 = arith.maximumf %19, %20 : vector<16x512xf32>
      %c0_14 = arith.constant 0 : index
      %c0_15 = arith.constant 0 : index
      %22 = vector.load %arg6[%c0_14, %c0_15] : memref<512x128xf32, #tpu.memory_space<vmem>>, vector<512x128xf32>
      %cst_16 = arith.constant dense<0.000000e+00> : vector<16x128xf32>
      %23 = tpu.matmul %21, %22, %cst_16 {dimension_numbers = #tpu.dot_dimension_numbers<[1], [0], [0], [1], [0, 0, 1, 1], [], []>} : vector<16x512xf32>, vector<512x128xf32>, vector<16x128xf32> -> vector<16x128xf32>
      %24 = vector.shape_cast %23 : vector<16x128xf32> to vector<1x16x128xf32>
      %c0_17 = arith.constant 0 : index
      %c0_18 = arith.constant 0 : index
      %c0_19 = arith.constant 0 : index
      %25 = vector.load %arg7[%c0_17, %c0_18, %c0_19] : memref<1x16x128xf32, #tpu.memory_space<vmem>>, vector<1x16x128xf32>
      tpu.vector_store %arg7[%c0_17, %c0_18, %c0_19], %24 {strides = array<i32>} : memref<1x16x128xf32, #tpu.memory_space<vmem>>, vector<1x16x128xf32>,
    } else {
    }
    return
  }
  func.func @transform_0(%arg0: i32, %arg1: i32) -> (i32, i32) {
    %c0_i32 = arith.constant 0 : i32
    %c0_i32_0 = arith.constant 0 : i32
    return %c0_i32, %arg1 : i32, i32
  }
  func.func @transform_1(%arg0: i32, %arg1: i32) -> (i32, i32) {
    %c0_i32 = arith.constant 0 : i32
    return %arg1, %arg0 : i32, i32
  }
  func.func @transform_2(%arg0: i32, %arg1: i32) -> (i32, i32) {
    %c0_i32 = arith.constant 0 : i32
    %c0_i32_0 = arith.constant 0 : i32
    return %c0_i32, %arg0 : i32, i32
  }
  func.func @transform_3(%arg0: i32, %arg1: i32) -> (i32, i32) {
    %c0_i32 = arith.constant 0 : i32
    %c0_i32_0 = arith.constant 0 : i32
    return %c0_i32, %arg0 : i32, i32
  }
  func.func @transform_4(%arg0: i32, %arg1: i32) -> (i32, i32) {
    %c0_i32 = arith.constant 0 : i32
    %c0_i32_0 = arith.constant 0 : i32
    return %arg0, %c0_i32 : i32, i32
  }
  func.func @transform_5(%arg0: i32, %arg1: i32) -> (i32, i32, i32) {
    %c0_i32 = arith.constant 0 : i32
    %c0_i32_0 = arith.constant 0 : i32
    %c0_i32_1 = arith.constant 0 : i32
    return %arg0, %c0_i32, %c0_i32_0 : i32, i32, i32
  }
}

</mosaic_0001>

<bundles_post_ra>
// kernel: dqn_forward.1
= control target key start
LH: loop header
LB: loop body
LE: loop exit
PB: predicated region body
PF: predicated region fallthrough
CT: control target
= control target key end

     0   :  { %10 = vsyncpa [#allocation5], 0  ;;  %s1647_s0 = inlined_call_operand.vmem [shape: bf16[16,1024], index: 0, kind: input, shape index: {}]   ;;  %s1648_s1 = inlined_call_operand.hbm [shape: s8[1024,512], index: 1, kind: input, shape index: {}]   ;;  %s1649_s2 = inlined_call_operand.vmem [shape: f32[1,512], index: 2, kind: input, shape index: {}]   ;;  %s1650_s3 = inlined_call_operand.vmem [shape: f32[1,512], index: 3, kind: input, shape index: {}]   ;;  %s1651_s4 = inlined_call_operand.hbm [shape: f32[512,128], index: 4, kind: input, shape index: {}]   ;;  %s1652_s5 = inlined_call_operand.vmem [shape: f32[1,16,128], index: 5, kind: output, shape index: {}]  }
   0x1   :  { %12 = vsyncpa [#allocation5 + $0x1], 0 }
   0x2   :  { %13 = vsyncpa [#allocation7], 0  ;;  %s1429_s18 = smov 0   ;;  %s1431_s19 = smov 0  }
   0x3   :  { %s1433_s20 = smov 0   ;;  %s1435_s21 = smov 0  }
   0x4   :  { %s1437_s22 = smov 0   ;;  %s1439_s23 = smov 0  }
   0x5 LB: > { %s1045_s24 = sadd.s32 4294967295, %s1391_s23   ;;  %s28_s25 = sadd.s32 1, %s1387_s22  ;;  %s1391_s23 = sphi %s1439_s23, %s19_s23   ;;  %s1387_s22 = sphi %s1437_s22, %s1672_s22   ;;  %s1383_s21 = sphi %s1435_s21, %s1671_s21   ;;  %s1379_s20 = sphi %s1433_s20, %s1670_s20   ;;  %s1375_s19 = sphi %s1431_s19, %s1669_s19   ;;  %s1371_s18 = sphi %s1429_s18, %s1668_s18  }
   0x6   : > { %p29_p0 = scmp.ge.s32.totalorder %s28_s25, 4  ;;  %s38_s26 = sadd.s32 1, %s1379_s20 }
   0x7   : > { %p45_p1 = scmp.ne.s32.totalorder %s1379_s20, %s1375_s19  ;;  %p46_p2 = scmp.eq.s32.totalorder %s1391_s23, 0 }
   0x8   : > { %s1674_s25 = smov (%p29_p0, %s28_s25), 0  ;;  %p79_p4 = scmp.ne.s32.totalorder %s1375_s19, %s1371_s18 }
   0x9   : > { %p1465_p3 = por %p46_p2, %p45_p1  ;;  %s35_s28 = ssub.s32 %s1387_s22, %s1674_s25 }
   0xa   : > { %p1472_p5 = scmp.eq.s32.totalorder %s1045_s24, 0  ;;  %p36_p6 = scmp.eq.s32.totalorder %s35_s28, 0 }
   0xb   : > { %s1658_s27 = scalar_select %p1465_p3, 1, 0 }
   0xc   : > { %s1659_s29 = scalar_select %p1472_p5, 1, 0 }
   0xd   : > { %p1046_p7 = scmp.ge.s32.totalorder %s1391_s23, 1  ;;  %p1479_p8 = por %p1472_p5, %p79_p4 }
   0xe   : > { %p194_p9 = scmp.lt.s32.totalorder %s1391_s23, 5  ;;  %s1393_s8 = smov [#allocation6]  }
   0xf   : > { %s1660_s30 = scalar_select %p1479_p8, 1, 0 }
  0x10   : > { %s1485_s6 = scalar_select %p36_p6, %s1379_s20, %s38_s26  }
  0x11   : > { %p1487_p10 = pnand %p1046_p7, %p194_p9  ;;  %s225_s9 = sshll.u32 %s1393_s8, 4  ;;  %s226_s9 = int_to_ptr.vmem [resolvable:$true] %s225_s9 }
  0x12   : > { %s1281_s13 = scalar_lea.hbm %s1651_s4, 8192 }
  0x13   : > { %s1661_s7 = scalar_select %p1487_p10, 1, 0 }
  0x14   : > { %p1219_p11 = pneg %p1487_p10  ;;  %p1282_p13 = scmp.ne.s32.totalorder %s1651_s4, %s1281_s13 }
  0x15   : > { %p1288_p4 = scmp.lt.u32.totalorder %s1281_s13, %s1651_s4 }
  0x16   : > { %p1495_p12 = pnand %p1219_p11, %p1472_p5 }
  0x18   : > { %p1283_p0 = pneg %p1495_p12 }
  0x1a   : > { %p1284_p1 = pnand %p1283_p0, %p1282_p13 }
  0x1c   : > { %p1285_p2 = pneg %p1284_p1 }
  0x1e   : > { %p1290_p6 = pnand %p1288_p4, %p1285_p2 }
  0x20   : > { %1293 = shalt.err (!%p1290_p6)
}
  0x21   : > { %s1294_s18 = scalar_lea.vmem %s226_s9, 8192  ;;  %p1302_p5 = scmp.lt.s32.totalorder %s226_s9, %s226_s9 }
  0x22   : > { %p1295_p7 = scmp.ne.s32.totalorder %s226_s9, %s1294_s18  ;;  %p1303_p8 = scmp.lt.s32.totalorder %s1294_s18, %s1294_s18 }
  0x24   : > { %p1297_p9 = pnand %p1295_p7, %p1283_p0  ;;  %p1304_p10 = por %p1303_p8, %p1302_p5 }
  0x26   : > { %p1298_p11 = pneg %p1297_p9 }
  0x28   : > { %p1305_p3 = pnand %p1304_p10, %p1298_p11 }
  0x2a   : > { %1308 = shalt.err (!%p1305_p3)
}
  0x2b   : > { %s1394_s24 = smov 128   ;;  %s1395_s26 = smov 8  }
  0x2c   : > { %1222 = dma.hbm_to_vmem [thread:$0]  (!%p1495_p12), %s1651_s4, 8192, %s226_s9, [#allocation7], %s1394_s24, %s1394_s24, %s1395_s26  }
  0x2d   : > { %p1050_p13 = scmp.ge.s32.totalorder %s1391_s23, 4 }
  0x2e   : > { %p1663_p1 = scmp.ne.s32.totalorder (!%p1050_p13), %s1658_s27, 0 }
  0x2f   : > { %235 = sbr.rel (%p1050_p13) target bundleno = 88 (0x58), region = 28 }
  0x36   : > { %238 = sbr.rel (!%p1663_p1) target bundleno = 61 (0x3d), region = 32  ;;  %s240_s11 = sand.u32 (%p1663_p1), 1, %s1379_s20  }
  0x37   : > { %s1070_s12 = sshll.u32 (%p1663_p1), %s1387_s22, 3  ;;  %s1051_s13 = sshll.u32 (%p1663_p1), %s240_s11, 4 }
  0x38   : > { %s245_s16 = scalar_lea.vmem (%p1663_p1), %s1647_s0, %s1070_s12  ;;  %s242_s10 = scalar_lea.vmem (%p1663_p1), [#allocation3], %s1051_s13 }
  0x39   : > { %v275_v0 = vld [vmem:[%s245_s16] sm:$0xff] (%p1663_p1) }
  0x3a   : > { %v277_v1 = vld [vmem:[%s245_s16 + $0x20] sm:$0xff] (%p1663_p1)  ;;  %276 = vst [vmem:[%s242_s10] sm:$0xff] (%p1663_p1), %v275_v0 }
  0x3b   : > { %278 = vst [vmem:[%s242_s10 + $0x8] sm:$0xff] (%p1663_p1), %v277_v1 }
  0x3d PF: > { %s285_s9 = sand.u32 1, %s1379_s20   ;;  %s1072_s17 = sshll.u32 %s1387_s22, 12 }
  0x3e   : > { %s1054_s18 = sshll.u32 %s285_s9, 8  ;;  %s1528_s28 = scalar_lea.hbm %s1648_s1, %s1072_s17 }
  0x3f   : > { %s289_s8 = scalar_lea.vmem [#allocation4], %s1054_s18  ;;  %s1532_s12 = scalar_lea.sflag [#allocation5], %s285_s9 }
  0x40   : > { %s299_s11 = sshll.u32 %s289_s8, 4  ;;  %s1309_s13 = scalar_lea.hbm %s1528_s28, 4096  ;;  %s1530_s11 = int_to_ptr.vmem [resolvable:$true] %s299_s11 }
  0x41   : > { %p1310_p3 = scmp.ne.s32.totalorder %s1528_s28, %s1309_s13  ;;  %p1664_p5 = scmp.ne.s32.totalorder %s1658_s27, 0 }
  0x42   : > { %s1313_s16 = scalar_lea.hbm %s1648_s1, 16384  ;;  %p1314_p12 = scmp.lt.u32.totalorder %s1528_s28, %s1648_s1 }
  0x43   : > { %p1311_p8 = pnand %p1310_p3, %p1664_p5  ;;  %p1315_p0 = scmp.lt.u32.totalorder %s1313_s16, %s1309_s13 }
  0x44   : > { %p1317_p4 = scmp.lt.u32.totalorder %s1309_s13, %s1528_s28 }
  0x45   : > { %p1312_p10 = pneg %p1311_p8  ;;  %p1316_p2 = por %p1315_p0, %p1314_p12 }
  0x47   : > { %p1318_p6 = por %p1317_p4, %p1316_p2 }
  0x49   : > { %p1319_p7 = pnand %p1318_p6, %p1312_p10 }
  0x4b   : > { %1322 = shalt.err (!%p1319_p7)
}
  0x4c   : > { %s1323_s9 = scalar_lea.vmem %s1530_s11, 4096  ;;  %s1396_s18 = smov [#allocation4]  }
  0x4d   : > { %p1324_p9 = scmp.ne.s32.totalorder %s1530_s11, %s1323_s9  ;;  %s1327_s24 = sshll.u32 %s1396_s18, 4  ;;  %s1328_s24 = int_to_ptr.vmem [resolvable:$false] %s1327_s24 }
  0x4e   : > { %s1329_s26 = scalar_lea.vmem %s1328_s24, 8192  ;;  %p1330_p1 = scmp.lt.s32.totalorder %s1530_s11, %s1328_s24 }
  0x4f   : > { %p1325_p11 = pnand %p1324_p9, %p1664_p5  ;;  %p1331_p3 = scmp.lt.s32.totalorder %s1329_s26, %s1323_s9 }
  0x51   : > { %p1326_p13 = pneg %p1325_p11  ;;  %p1332_p8 = por %p1331_p3, %p1330_p1 }
  0x53   : > { %p1333_p12 = pnand %p1332_p8, %p1326_p13 }
  0x55   : > { %1336 = shalt.err (!%p1333_p12)
}
  0x56   : > { %s1397_s8 = smov 512   ;;  %s1398_s13 = smov 32  }
  0x57   : > { %1215 = dma.hbm_to_vmem [thread:$0]  (%p1664_p5), %s1528_s28, 4096, %s1530_s11, %s1532_s12, %s1397_s8, %s1397_s8, %s1398_s13  }
  0x58 PF: > { %p1665_p10 = scmp.ne.s32.totalorder %s1661_s7, 0 }
  0x59   : > { %s314_s14 = sand.u32 (!%p1665_p10), 1, %s1375_s19   ;;  %p1666_p0 = scmp.ne.s32.totalorder (!%p1665_p10), %s1660_s30, 0 }
  0x5a   : > { %311 = sbr.rel (%p1665_p10) target bundleno = 655 (0x28f), region = 74  ;;  %s1059_s15 = sshll.u32 (!%p1665_p10), %s314_s14, 4 }
  0x5b   : > { %s1060_s16 = sshll.u32 (!%p1665_p10), %s314_s14, 8  ;;  %s1559_s10 = scalar_lea.vmem (!%p1665_p10), [#allocation3], %s1059_s15 }
  0x5c   : > { %s321_s17 = scalar_lea.sflag (!%p1665_p10), [#allocation5], %s314_s14  ;;  %s1561_s9 = scalar_lea.vmem (!%p1665_p10), [#allocation4], %s1060_s16 }
  0x61   : > { %1362 = dma.done.wait (%p1666_p0), %s321_s17, 4096  }
  0x62   : > { %1364 = vsyncadd (%p1666_p0), %s321_s17, 4294963200  ;;  %p1667_p5 = scmp.ne.s32.totalorder %s1659_s29, 0 }
  0x64   : > { %1366 = dma.done.wait (%p1667_p5), [#allocation7], 8192  }
  0x65   : > { %1368 = vsyncadd (%p1667_p5), [#allocation7], 4294959104  ;;  %v389_v2 = vld [vmem:[%s1561_s9 + $0x8] sm:$0xff]  ;;  %v391_v3 = vld [vmem:[%s1561_s9 + $0x18] sm:$0xff]  ;;  %p1064_p2 = scmp.ne.s32.totalorder %s1383_s21, 0 }
  0x66   : > { %v388_v4 = vld [vmem:[%s1561_s9] sm:$0xff]  ;;  %v421_v5 = vunpack.c.l.s8.bf16 %v389_v2  ;;  %v425_v6 = vunpack.c.h.s8.bf16 %v389_v2  ;;  %v423_v7 = vunpack.c.l.s8.bf16 %v391_v3  ;;  %v427_v8 = vunpack.c.h.s8.bf16 %v391_v3  ;;  %v390_v9 = vld [vmem:[%s1561_s9 + $0x10] sm:$0xff]  ;;  %v393_v12 = vld [vmem:[%s1561_s9 + $0x28] sm:$0xff] }
  0x67   : > { %v420_v10 = vunpack.c.l.s8.bf16 %v388_v4  ;;  %v422_v11 = vunpack.c.l.s8.bf16 %v390_v9  ;;  %v395_v13 = vld [vmem:[%s1561_s9 + $0x38] sm:$0xff]  ;;  %v424_v14 = vunpack.c.h.s8.bf16 %v388_v4  ;;  %v426_v15 = vunpack.c.h.s8.bf16 %v390_v9  ;;  %v392_v18 = vld [vmem:[%s1561_s9 + $0x20] sm:$0xff]  ;;  %v394_v19 = vld [vmem:[%s1561_s9 + $0x30] sm:$0xff] }
  0x68   : > { %494 = vmatprep.subr.bf16.mxu0 %v421_v5  ;;  %537 = vmatprep.subr.bf16.mxu1 %v423_v7  ;;  %v429_v16 = vunpack.c.l.s8.bf16 %v393_v12  ;;  %v431_v17 = vunpack.c.l.s8.bf16 %v395_v13  ;;  %v428_v20 = vunpack.c.l.s8.bf16 %v392_v18  ;;  %v430_v21 = vunpack.c.l.s8.bf16 %v394_v19  ;;  %v397_v24 = vld [vmem:[%s1561_s9 + $0x48] sm:$0xff]  ;;  %v399_v25 = vld [vmem:[%s1561_s9 + $0x58] sm:$0xff]  ;;  %v396_v31 = vld [vmem:[%s1561_s9 + $0x40] sm:$0xff] }
  0x69   : > { %495 = vmatpush1.bf16.msra.mxu0 %v420_v10  ;;  %538 = vmatpush1.bf16.msra.mxu1 %v422_v11  ;;  %v433_v22 = vunpack.c.h.s8.bf16 %v393_v12  ;;  %v435_v23 = vunpack.c.h.s8.bf16 %v395_v13  ;;  %v1280_v26 = vld [vmem:[%s1559_s10 + $0x4] ss:$8 sps:$4 sm:$0xff]   ;;  %v432_v27 = vunpack.c.h.s8.bf16 %v392_v18  ;;  %v434_v28 = vunpack.c.h.s8.bf16 %v394_v19 }
  0x6a   : > { %496 = vmatprep.subr.bf16.mxu0 %v425_v6  ;;  %539 = vmatprep.subr.bf16.mxu1 %v427_v8  ;;  %v437_v29 = vunpack.c.l.s8.bf16 %v397_v24  ;;  %v439_v30 = vunpack.c.l.s8.bf16 %v399_v25  ;;  %v398_v32 = vld [vmem:[%s1561_s9 + $0x50] sm:$0xff]  ;;  %v436_v33 = vunpack.c.l.s8.bf16 %v396_v31  ;;  %v441_v35 = vunpack.c.h.s8.bf16 %v397_v24  ;;  %v401_v37 = vld [vmem:[%s1561_s9 + $0x68] sm:$0xff]  ;;  %v403_v38 = vld [vmem:[%s1561_s9 + $0x78] sm:$0xff] }
  0x6b   : > { %526 = vmatprep.mubr.bf16.mxu0 %v1280_v26  ;;  %569 = vmatprep.mubr.bf16.mxu1 %v1280_v26  ;;  %v438_v34 = vunpack.c.l.s8.bf16 %v398_v32  ;;  %v443_v36 = vunpack.c.h.s8.bf16 %v399_v25  ;;  %v440_v39 = vunpack.c.h.s8.bf16 %v396_v31  ;;  %v442_v40 = vunpack.c.h.s8.bf16 %v398_v32  ;;  %v400_v43 = vld [vmem:[%s1561_s9 + $0x60] sm:$0xff]  ;;  %v402_v44 = vld [vmem:[%s1561_s9 + $0x70] sm:$0xff]  ;;  %v405_v49 = vld [vmem:[%s1561_s9 + $0x88] sm:$0xff] }
  0x6c   : > { %v445_v41 = vunpack.c.l.s8.bf16 %v401_v37  ;;  %v447_v42 = vunpack.c.l.s8.bf16 %v403_v38  ;;  %v444_v45 = vunpack.c.l.s8.bf16 %v400_v43  ;;  %v446_v46 = vunpack.c.l.s8.bf16 %v402_v44  ;;  %v407_v50 = vld [vmem:[%s1561_s9 + $0x98] sm:$0xff]  ;;  %v404_v55 = vld [vmem:[%s1561_s9 + $0x80] sm:$0xff]  ;;  %v406_v56 = vld [vmem:[%s1561_s9 + $0x90] sm:$0xff] }
  0x6d   : > { %497 = vmatpush1.bf16.msra.mxu0 %v424_v14  ;;  %540 = vmatpush1.bf16.msra.mxu1 %v426_v15  ;;  %v449_v47 = vunpack.c.h.s8.bf16 %v401_v37  ;;  %v451_v48 = vunpack.c.h.s8.bf16 %v403_v38  ;;  %v448_v51 = vunpack.c.h.s8.bf16 %v400_v43  ;;  %v450_v52 = vunpack.c.h.s8.bf16 %v402_v44  ;;  %v409_v61 = vld [vmem:[%s1561_s9 + $0xa8] sm:$0xff]  ;;  %v411_v62 = vld [vmem:[%s1561_s9 + $0xb8] sm:$0xff]  ;;  %v408_v3 = vld [vmem:[%s1561_s9 + $0xa0] sm:$0xff] }
  0x6e   : > { %498 = vmatprep.subr.bf16.mxu0 %v429_v16  ;;  %541 = vmatprep.subr.bf16.mxu1 %v431_v17  ;;  %v453_v53 = vunpack.c.l.s8.bf16 %v405_v49  ;;  %v455_v54 = vunpack.c.l.s8.bf16 %v407_v50  ;;  %v452_v57 = vunpack.c.l.s8.bf16 %v404_v55  ;;  %v454_v58 = vunpack.c.l.s8.bf16 %v406_v56  ;;  %v410_v4 = vld [vmem:[%s1561_s9 + $0xb0] sm:$0xff]  ;;  %v413_v9 = vld [vmem:[%s1561_s9 + $0xc8] sm:$0xff]  ;;  %v415_v10 = vld [vmem:[%s1561_s9 + $0xd8] sm:$0xff] }
  0x6f   : > { %v457_v59 = vunpack.c.h.s8.bf16 %v405_v49  ;;  %v459_v60 = vunpack.c.h.s8.bf16 %v407_v50  ;;  %v456_v63 = vunpack.c.h.s8.bf16 %v404_v55  ;;  %v458_v0 = vunpack.c.h.s8.bf16 %v406_v56  ;;  %v412_v15 = vld [vmem:[%s1561_s9 + $0xc0] sm:$0xff]  ;;  %v414_v16 = vld [vmem:[%s1561_s9 + $0xd0] sm:$0xff] }
  0x70   : > { %v461_v1 = vunpack.c.l.s8.bf16 %v409_v61  ;;  %v463_v2 = vunpack.c.l.s8.bf16 %v411_v62  ;;  %v460_v5 = vunpack.c.l.s8.bf16 %v408_v3  ;;  %v462_v6 = vunpack.c.l.s8.bf16 %v410_v4 }
  0x71   : > { %499 = vmatpush1.bf16.msra.mxu0 %v428_v20  ;;  %542 = vmatpush1.bf16.msra.mxu1 %v430_v21  ;;  %v465_v7 = vunpack.c.h.s8.bf16 %v409_v61  ;;  %v467_v8 = vunpack.c.h.s8.bf16 %v411_v62  ;;  %v464_v11 = vunpack.c.h.s8.bf16 %v408_v3  ;;  %v466_v12 = vunpack.c.h.s8.bf16 %v410_v4  ;;  %v417_v21 = vld [vmem:[%s1561_s9 + $0xe8] sm:$0xff] }
  0x72   : > { %500 = vmatprep.subr.bf16.mxu0 %v433_v22  ;;  %543 = vmatprep.subr.bf16.mxu1 %v435_v23  ;;  %v469_v13 = vunpack.c.l.s8.bf16 %v413_v9  ;;  %v471_v14 = vunpack.c.l.s8.bf16 %v415_v10  ;;  %v468_v17 = vunpack.c.l.s8.bf16 %v412_v15  ;;  %v470_v18 = vunpack.c.l.s8.bf16 %v414_v16  ;;  %v419_v22 = vld [vmem:[%s1561_s9 + $0xf8] sm:$0xff] }
  0x73   : > { %v473_v19 = vunpack.c.h.s8.bf16 %v413_v9  ;;  %v475_v20 = vunpack.c.h.s8.bf16 %v415_v10  ;;  %v472_v23 = vunpack.c.h.s8.bf16 %v412_v15  ;;  %v474_v24 = vunpack.c.h.s8.bf16 %v414_v16 }
  0x74   : > { %v477_v25 = vunpack.c.l.s8.bf16 %v417_v21  ;;  %v479_v26 = vunpack.c.l.s8.bf16 %v419_v22  ;;  %v481_v31 = vunpack.c.h.s8.bf16 %v417_v21  ;;  %v483_v32 = vunpack.c.h.s8.bf16 %v419_v22 }
  0x75   : > { %501 = vmatpush1.bf16.msra.mxu0 %v432_v27  ;;  %544 = vmatpush1.bf16.msra.mxu1 %v434_v28  ;;  %v416_v27 = vld [vmem:[%s1561_s9 + $0xe0] sm:$0xff]  ;;  %v418_v28 = vld [vmem:[%s1561_s9 + $0xf0] sm:$0xff] }
  0x76   : > { %502 = vmatprep.subr.bf16.mxu0 %v437_v29  ;;  %545 = vmatprep.subr.bf16.mxu1 %v439_v30  ;;  %v476_v29 = vunpack.c.l.s8.bf16 %v416_v27  ;;  %v478_v30 = vunpack.c.l.s8.bf16 %v418_v28 }
  0x79   : > { %503 = vmatpush1.bf16.msra.mxu0 %v436_v33  ;;  %546 = vmatpush1.bf16.msra.mxu1 %v438_v34  ;;  %v480_v33 = vunpack.c.h.s8.bf16 %v416_v27  ;;  %v482_v34 = vunpack.c.h.s8.bf16 %v418_v28 }
  0x7a   : > { %504 = vmatprep.subr.bf16.mxu0 %v441_v35  ;;  %547 = vmatprep.subr.bf16.mxu1 %v443_v36  ;;  %v1278_v35 = vld [vmem:[%s1559_s10] ss:$8 sps:$4 sm:$0xff]  }
  0x7d   : > { %505 = vmatpush1.bf16.msra.mxu0 %v440_v39  ;;  %548 = vmatpush1.bf16.msra.mxu1 %v442_v40 }
  0x7e   : > { %506 = vmatprep.subr.bf16.mxu0 %v445_v41  ;;  %549 = vmatprep.subr.bf16.mxu1 %v447_v42 }
  0x81   : > { %507 = vmatpush1.bf16.msra.mxu0 %v444_v45  ;;  %550 = vmatpush1.bf16.msra.mxu1 %v446_v46 }
  0x82   : > { %508 = vmatprep.subr.bf16.mxu0 %v449_v47  ;;  %551 = vmatprep.subr.bf16.mxu1 %v451_v48 }
  0x85   : > { %509 = vmatpush1.bf16.msra.mxu0 %v448_v51  ;;  %552 = vmatpush1.bf16.msra.mxu1 %v450_v52 }
  0x86   : > { %510 = vmatprep.subr.bf16.mxu0 %v453_v53  ;;  %553 = vmatprep.subr.bf16.mxu1 %v455_v54 }
  0x89   : > { %511 = vmatpush1.bf16.msra.mxu0 %v452_v57  ;;  %554 = vmatpush1.bf16.msra.mxu1 %v454_v58 }
  0x8a   : > { %512 = vmatprep.subr.bf16.mxu0 %v457_v59  ;;  %555 = vmatprep.subr.bf16.mxu1 %v459_v60 }
  0x8d   : > { %513 = vmatpush1.bf16.msra.mxu0 %v456_v63  ;;  %556 = vmatpush1.bf16.msra.mxu1 %v458_v0 }
  0x8e   : > { %514 = vmatprep.subr.bf16.mxu0 %v461_v1  ;;  %557 = vmatprep.subr.bf16.mxu1 %v463_v2 }
  0x91   : > { %515 = vmatpush1.bf16.msra.mxu0 %v460_v5  ;;  %558 = vmatpush1.bf16.msra.mxu1 %v462_v6 }
  0x92   : > { %516 = vmatprep.subr.bf16.mxu0 %v465_v7  ;;  %559 = vmatprep.subr.bf16.mxu1 %v467_v8 }
  0x95   : > { %517 = vmatpush1.bf16.msra.mxu0 %v464_v11  ;;  %560 = vmatpush1.bf16.msra.mxu1 %v466_v12 }
  0x96   : > { %518 = vmatprep.subr.bf16.mxu0 %v469_v13  ;;  %561 = vmatprep.subr.bf16.mxu1 %v471_v14 }
  0x99   : > { %519 = vmatpush1.bf16.msra.mxu0 %v468_v17  ;;  %562 = vmatpush1.bf16.msra.mxu1 %v470_v18 }
  0x9a   : > { %520 = vmatprep.subr.bf16.mxu0 %v473_v19  ;;  %563 = vmatprep.subr.bf16.mxu1 %v475_v20 }
  0x9d   : > { %521 = vmatpush1.bf16.msra.mxu0 %v472_v23  ;;  %564 = vmatpush1.bf16.msra.mxu1 %v474_v24 }
  0x9e   : > { %522 = vmatprep.subr.bf16.mxu0 %v477_v25  ;;  %565 = vmatprep.subr.bf16.mxu1 %v479_v26 }
  0xa1   : > { %523 = vmatpush1.bf16.msra.mxu0 %v476_v29  ;;  %566 = vmatpush1.bf16.msra.mxu1 %v478_v30 }
  0xa2   : > { %524 = vmatprep.subr.bf16.mxu0 %v481_v31  ;;  %567 = vmatprep.subr.bf16.mxu1 %v483_v32 }
  0xa5   : > { %525 = vmatpush1.bf16.msra.mxu0 %v480_v33  ;;  %568 = vmatpush1.bf16.msra.mxu1 %v482_v34 }
  0xa8   : > { %527 = vmatmul.mubr.bf16.vlgmr.msra.gmra.mrb[0].mxu0 %v1278_v35  ;;  %570 = vmatmul.mubr.bf16.vlgmr.msra.gmra.mrb[0].mxu1 %v1278_v35 }
 0x178   : > { %583 = sbr.rel (%p1064_p2) target bundleno = 384 (0x180), region = 90 }
 0x17b   : > { %v528_v36 = vpop.f32.mrb[0].mxu0  ;;  %v571_v37 = vpop.f32.mrb[0].mxu1 }
 0x17c   : > { %v530_v38 = vpop.f32.mrb[1].mxu0  ;;  %v573_v39 = vpop.f32.mrb[1].mxu1  ;;  %584 = vst [vmem:[#allocation2] sm:$0xff] (!%p1064_p2), %v528_v36  ;;  %586 = vst [vmem:[#allocation2 + $0x10] sm:$0xff] (!%p1064_p2), %v571_v37 }
 0x17d   : > { %v532_v40 = vpop.f32.mrb[2].mxu0  ;;  %v575_v41 = vpop.f32.mrb[2].mxu1  ;;  %585 = vst [vmem:[#allocation2 + $0x8] sm:$0xff] (!%p1064_p2), %v530_v38  ;;  %587 = vst [vmem:[#allocation2 + $0x18] sm:$0xff] (!%p1064_p2), %v573_v39 }
 0x17e   : > { %v534_v42 = vpop.f32.mrb[3].mxu0  ;;  %v577_v43 = vpop.f32.mrb[3].mxu1  ;;  %588 = vst [vmem:[#allocation2 + $0x20] sm:$0xff] (!%p1064_p2), %v532_v40  ;;  %590 = vst [vmem:[#allocation2 + $0x30] sm:$0xff] (!%p1064_p2), %v575_v41 }
 0x17f   : > { %589 = vst [vmem:[#allocation2 + $0x28] sm:$0xff] %v534_v42  ;;  %591 = vst [vmem:[#allocation2 + $0x38] sm:$0xff] %v577_v43 }
 0x180 PF: > { %p1065_p4 = scmp.eq.s32.totalorder %s1383_s21, 0 }
 0x182   : > { %595 = sbr.rel (%p1065_p4) target bundleno = 395 (0x18b), region = 94 }
 0x184   : > { %v596_v44 = vld [vmem:[#allocation2] sm:$0xff] (!%p1065_p4)  ;;  %v598_v46 = vld [vmem:[#allocation2 + $0x10] sm:$0xff] (!%p1065_p4) }
 0x185   : > { %v597_v45 = vld [vmem:[#allocation2 + $0x8] sm:$0xff] (!%p1065_p4)  ;;  %v604_v47 = vadd.f32 (!%p1065_p4), %v596_v44, %v528_v36  ;;  %v606_v49 = vadd.f32 (!%p1065_p4), %v598_v46, %v571_v37  ;;  %v599_v50 = vld [vmem:[#allocation2 + $0x18] sm:$0xff] (!%p1065_p4) }
 0x186   : > { %v605_v48 = vadd.f32 (!%p1065_p4), %v597_v45, %v530_v38  ;;  %v600_v51 = vld [vmem:[#allocation2 + $0x20] sm:$0xff] (!%p1065_p4)  ;;  %v601_v52 = vld [vmem:[#allocation2 + $0x28] sm:$0xff] (!%p1065_p4)  ;;  %v607_v53 = vadd.f32 (!%p1065_p4), %v599_v50, %v573_v39  ;;  %v602_v56 = vld [vmem:[#allocation2 + $0x30] sm:$0xff] (!%p1065_p4) }
 0x187   : > { %v608_v54 = vadd.f32 (!%p1065_p4), %v600_v51, %v532_v40  ;;  %v609_v55 = vadd.f32 (!%p1065_p4), %v601_v52, %v534_v42  ;;  %v603_v57 = vld [vmem:[#allocation2 + $0x38] sm:$0xff] (!%p1065_p4)  ;;  %612 = vst [vmem:[#allocation2] sm:$0xff] (!%p1065_p4), %v604_v47  ;;  %614 = vst [vmem:[#allocation2 + $0x10] sm:$0xff] (!%p1065_p4), %v606_v49  ;;  %v610_v58 = vadd.f32 (!%p1065_p4), %v602_v56, %v575_v41 }
 0x188   : > { %613 = vst [vmem:[#allocation2 + $0x8] sm:$0xff] (!%p1065_p4), %v605_v48  ;;  %v611_v59 = vadd.f32 (!%p1065_p4), %v603_v57, %v577_v43  ;;  %615 = vst [vmem:[#allocation2 + $0x18] sm:$0xff] (!%p1065_p4), %v607_v53 }
 0x189   : > { %616 = vst [vmem:[#allocation2 + $0x20] sm:$0xff] %v608_v54  ;;  %617 = vst [vmem:[#allocation2 + $0x28] sm:$0xff] %v609_v55 }
 0x18a   : > { %618 = vst [vmem:[#allocation2 + $0x30] sm:$0xff] %v610_v58  ;;  %619 = vst [vmem:[#allocation2 + $0x38] sm:$0xff] %v611_v59 }
 0x18b PF: > { %p1066_p6 = scmp.ne.s32.totalorder %s1383_s21, 3 }
 0x18c   : > { %v716_v60 = vld [vmem:[#allocation6 + $0x80] sm:$0xff] (!%p1066_p6)  ;;  %v717_v61 = vld [vmem:[#allocation6 + $0x88] sm:$0xff] (!%p1066_p6)  ;;  %v718_v7 = vld [vmem:[#allocation6 + $0x90] sm:$0xff] (!%p1066_p6)  ;;  %v634_v43 = vlaneseq (!%p1066_p6) }
 0x18d   : > { %623 = sbr.rel (%p1066_p6) target bundleno = 655 (0x28f), region = 98  ;;  %v748_v62 = vld [vmem:[#allocation6 + $0x180] sm:$0xff] (!%p1066_p6)  ;;  %v1149_v63 = vpack.c.bf16 (!%p1066_p6), %v717_v61, %v716_v60  ;;  %v749_v0 = vld [vmem:[#allocation6 + $0x188] sm:$0xff] (!%p1066_p6)  ;;  %v719_v9 = vld [vmem:[#allocation6 + $0x98] sm:$0xff] (!%p1066_p6) }
 0x18e   : > { %v700_v1 = vld [vmem:[#allocation6] sm:$0xff] (!%p1066_p6)  ;;  %v701_v2 = vld [vmem:[#allocation6 + $0x8] sm:$0xff] (!%p1066_p6)  ;;  %v1181_v3 = vpack.c.bf16 (!%p1066_p6), %v749_v0, %v748_v62  ;;  %v750_v10 = vld [vmem:[#allocation6 + $0x190] sm:$0xff] (!%p1066_p6)  ;;  %v1153_v12 = vpack.c.bf16 (!%p1066_p6), %v719_v9, %v718_v7  ;;  %v635_v59 = vshrl.u32 (!%p1066_p6), %v634_v43, 7 }
 0x18f   : > { %v1151_v4 = vpack.c.bf16 (!%p1066_p6), %v701_v2, %v700_v1  ;;  %v732_v5 = vld [vmem:[#allocation6 + $0x100] sm:$0xff] (!%p1066_p6)  ;;  %v733_v6 = vld [vmem:[#allocation6 + $0x108] sm:$0xff] (!%p1066_p6)  ;;  %1150 = vmatprep.subr.bf16.mxu0 (!%p1066_p6), %v1149_v63  ;;  %v751_v11 = vld [vmem:[#allocation6 + $0x198] sm:$0xff] (!%p1066_p6) }
 0x190   : > { %v1183_v8 = vpack.c.bf16 (!%p1066_p6), %v733_v6, %v732_v5  ;;  %1182 = vmatprep.subr.bf16.mxu1 (!%p1066_p6), %v1181_v3  ;;  %v1185_v13 = vpack.c.bf16 (!%p1066_p6), %v751_v11, %v750_v10  ;;  %v702_v14 = vld [vmem:[#allocation6 + $0x10] sm:$0xff] (!%p1066_p6)  ;;  %v703_v15 = vld [vmem:[#allocation6 + $0x18] sm:$0xff] (!%p1066_p6)  ;;  %v720_v19 = vld [vmem:[#allocation6 + $0xa0] sm:$0xff] (!%p1066_p6) }
 0x191   : > { %1152 = vmatpush3.bf16.msra.mxu0 (!%p1066_p6), %v1151_v4  ;;  %v734_v16 = vld [vmem:[#allocation6 + $0x110] sm:$0xff] (!%p1066_p6)  ;;  %v1155_v17 = vpack.c.bf16 (!%p1066_p6), %v703_v15, %v702_v14  ;;  %v735_v18 = vld [vmem:[#allocation6 + $0x118] sm:$0xff] (!%p1066_p6)  ;;  %v721_v20 = vld [vmem:[#allocation6 + $0xa8] sm:$0xff] (!%p1066_p6)  ;;  %v636_v14 = vsub.s32 (!%p1066_p6), 0, %v635_v59 }
 0x192   : > { %1184 = vmatpush3.bf16.msra.mxu1 (!%p1066_p6), %v1183_v8  ;;  %1154 = vmatprep.subr.bf16.mxu0 (!%p1066_p6), %v1153_v12  ;;  %v1187_v21 = vpack.c.bf16 (!%p1066_p6), %v735_v18, %v734_v16  ;;  %v1157_v22 = vpack.c.bf16 (!%p1066_p6), %v721_v20, %v720_v19  ;;  %v752_v23 = vld [vmem:[#allocation6 + $0x1a0] sm:$0xff] (!%p1066_p6)  ;;  %v753_v24 = vld [vmem:[#allocation6 + $0x1a8] sm:$0xff] (!%p1066_p6)  ;;  %v722_v31 = vld [vmem:[#allocation6 + $0xb0] sm:$0xff] (!%p1066_p6)  ;;  %v640_v12 = vsub.s32 (!%p1066_p6), 1, %v635_v59 }
 0x193   : > { %1186 = vmatprep.subr.bf16.mxu1 (!%p1066_p6), %v1185_v13  ;;  %v704_v25 = vld [vmem:[#allocation6 + $0x20] sm:$0xff] (!%p1066_p6)  ;;  %v1189_v26 = vpack.c.bf16 (!%p1066_p6), %v753_v24, %v752_v23  ;;  %v705_v27 = vld [vmem:[#allocation6 + $0x28] sm:$0xff] (!%p1066_p6)  ;;  %v723_v32 = vld [vmem:[#allocation6 + $0xb8] sm:$0xff] (!%p1066_p6)  ;;  %v648_v13 = vsub.s32 (!%p1066_p6), 3, %v635_v59 }
 0x194   : > { %v736_v28 = vld [vmem:[#allocation6 + $0x120] sm:$0xff]  ;;  %v737_v29 = vld [vmem:[#allocation6 + $0x128] sm:$0xff]  ;;  %v1159_v30 = vpack.c.bf16 %v705_v27, %v704_v25  ;;  %v754_v33 = vld [vmem:[#allocation6 + $0x1b0] sm:$0xff]  ;;  %v1161_v35 = vpack.c.bf16 %v723_v32, %v722_v31 }
 0x195   : > { %1156 = vmatpush3.bf16.msra.mxu0 %v1155_v17  ;;  %v1191_v34 = vpack.c.bf16 %v737_v29, %v736_v28  ;;  %v755_v36 = vld [vmem:[#allocation6 + $0x1b8] sm:$0xff]  ;;  %v706_v37 = vld [vmem:[#allocation6 + $0x30] sm:$0xff]  ;;  %v724_v42 = vld [vmem:[#allocation6 + $0xc0] sm:$0xff]  ;;  %v644_v17 = vsub.s32 2, %v635_v59 }
 0x196   : > { %1188 = vmatpush3.bf16.msra.mxu1 %v1187_v21  ;;  %1158 = vmatprep.subr.bf16.mxu0 %v1157_v22  ;;  %v707_v38 = vld [vmem:[#allocation6 + $0x38] sm:$0xff]  ;;  %v1193_v39 = vpack.c.bf16 %v755_v36, %v754_v33  ;;  %v738_v40 = vld [vmem:[#allocation6 + $0x130] sm:$0xff]  ;;  %v725_v44 = vld [vmem:[#allocation6 + $0xc8] sm:$0xff] }
 0x197   : > { %1190 = vmatprep.subr.bf16.mxu1 %v1189_v26  ;;  %v739_v41 = vld [vmem:[#allocation6 + $0x138] sm:$0xff]  ;;  %v756_v45 = vld [vmem:[#allocation6 + $0x1c0] sm:$0xff]  ;;  %v757_v46 = vld [vmem:[#allocation6 + $0x1c8] sm:$0xff]  ;;  %v1163_v47 = vpack.c.bf16 %v707_v38, %v706_v37  ;;  %v1165_v51 = vpack.c.bf16 %v725_v44, %v724_v42 }
 0x198   : > { %v708_v48 = vld [vmem:[#allocation6 + $0x40] sm:$0xff]  ;;  %v709_v49 = vld [vmem:[#allocation6 + $0x48] sm:$0xff]  ;;  %v1195_v50 = vpack.c.bf16 %v739_v41, %v738_v40  ;;  %v726_v54 = vld [vmem:[#allocation6 + $0xd0] sm:$0xff]  ;;  %v1197_v55 = vpack.c.bf16 %v757_v46, %v756_v45 }
 0x199   : > { %1160 = vmatpush3.bf16.msra.mxu0 %v1159_v30  ;;  %v740_v52 = vld [vmem:[#allocation6 + $0x140] sm:$0xff]  ;;  %v741_v53 = vld [vmem:[#allocation6 + $0x148] sm:$0xff]  ;;  %v727_v56 = vld [vmem:[#allocation6 + $0xd8] sm:$0xff]  ;;  %v1167_v63 = vpack.c.bf16 %v709_v49, %v708_v48 }
 0x19a   : > { %1192 = vmatpush3.bf16.msra.mxu1 %v1191_v34  ;;  %1162 = vmatprep.subr.bf16.mxu0 %v1161_v35  ;;  %v758_v57 = vld [vmem:[#allocation6 + $0x1d0] sm:$0xff]  ;;  %v759_v58 = vld [vmem:[#allocation6 + $0x1d8] sm:$0xff]  ;;  %v728_v1 = vld [vmem:[#allocation6 + $0xe0] sm:$0xff]  ;;  %v1199_v3 = vpack.c.bf16 %v741_v53, %v740_v52  ;;  %v1169_v4 = vpack.c.bf16 %v727_v56, %v726_v54 }
 0x19b   : > { %1194 = vmatprep.subr.bf16.mxu1 %v1193_v39  ;;  %v710_v60 = vld [vmem:[#allocation6 + $0x50] sm:$0xff]  ;;  %v711_v61 = vld [vmem:[#allocation6 + $0x58] sm:$0xff]  ;;  %v729_v2 = vld [vmem:[#allocation6 + $0xe8] sm:$0xff]  ;;  %v1201_v8 = vpack.c.bf16 %v759_v58, %v758_v57 }
 0x19c   : > { %v742_v62 = vld [vmem:[#allocation6 + $0x150] sm:$0xff]  ;;  %v743_v0 = vld [vmem:[#allocation6 + $0x158] sm:$0xff]  ;;  %v760_v5 = vld [vmem:[#allocation6 + $0x1e0] sm:$0xff]  ;;  %v1171_v18 = vpack.c.bf16 %v711_v61, %v710_v60  ;;  %v1173_v20 = vpack.c.bf16 %v729_v2, %v728_v1 }
 0x19d   : > { %1164 = vmatpush3.bf16.msra.mxu0 %v1163_v47  ;;  %v761_v6 = vld [vmem:[#allocation6 + $0x1e8] sm:$0xff]  ;;  %v1608_v7 = vld [vmem:[#allocation6 + $0x60] sm:$0xff]  ;;  %v730_v15 = vld [vmem:[#allocation6 + $0xf0] sm:$0xff]  ;;  %v1203_v19 = vpack.c.bf16 %v743_v0, %v742_v62 }
 0x19e   : > { %1196 = vmatpush3.bf16.msra.mxu1 %v1195_v50  ;;  %1166 = vmatprep.subr.bf16.mxu0 %v1165_v51  ;;  %v713_v9 = vld [vmem:[#allocation6 + $0x68] sm:$0xff]  ;;  %v1610_v10 = vld [vmem:[#allocation6 + $0x160] sm:$0xff]  ;;  %v731_v16 = vld [vmem:[#allocation6 + $0xf8] sm:$0xff]  ;;  %v1205_v21 = vpack.c.bf16 %v761_v6, %v760_v5 }
 0x19f   : > { %1198 = vmatprep.subr.bf16.mxu1 %v1197_v55  ;;  %v1612_v11 = vld [vmem:[#allocation6 + $0x168] sm:$0xff]  ;;  %v1175_v22 = vpack.c.bf16 %v713_v9, %v1608_v7  ;;  %v762_v24 = vld [vmem:[#allocation6 + $0x1f0] sm:$0xff]  ;;  %v763_v25 = vld [vmem:[#allocation6 + $0x1f8] sm:$0xff]  ;;  %v1177_v28 = vpack.c.bf16 %v731_v16, %v730_v15 }
 0x1a0   : > { %v1207_v23 = vpack.c.bf16 %v1612_v11, %v1610_v10  ;;  %v625_v26 = vld [vmem:[#allocation2 + $0x8] sm:$0xff]  ;;  %v632_v27 = vld [vmem:[%s1650_s3] sm:$0xf]  ;;  %v627_v31 = vld [vmem:[#allocation2 + $0x18] sm:$0xff]  ;;  %v1209_v53 = vpack.c.bf16 %v763_v25, %v762_v24 }
 0x1a1   : > { %1168 = vmatpush3.bf16.msra.mxu0 %v1167_v63  ;;  %v641_v29 = vrot.slane %v632_v27, %v640_v12  ;;  %v662_v30 = vld [vmem:[%s1649_s2] sm:$0xf]  ;;  %v649_v32 = vrot.slane %v632_v27, %v648_v13  ;;  %v637_v34 = vrot.slane %v632_v27, %v636_v14  ;;  %v626_v38 = vld [vmem:[#allocation2 + $0x10] sm:$0xff]  ;;  %v645_v39 = vrot.slane %v632_v27, %v644_v17  ;;  %v629_v40 = vld [vmem:[#allocation2 + $0x28] sm:$0xff] }
 0x1a2   : > { %1200 = vmatpush3.bf16.msra.mxu1 %v1199_v3  ;;  %1170 = vmatprep.subr.bf16.mxu0 %v1169_v4  ;;  %v624_v33 = vld [vmem:[#allocation2] sm:$0xff]  ;;  %v671_v35 = vrot.slane %v662_v30, %v640_v12  ;;  %v679_v36 = vrot.slane %v662_v30, %v648_v13  ;;  %v667_v37 = vrot.slane %v662_v30, %v636_v14  ;;  %v631_v41 = vld [vmem:[#allocation2 + $0x38] sm:$0xff]  ;;  %v714_v42 = vld [vmem:[#allocation6 + $0x70] sm:$0xff] }
 0x1a3   : > { %1202 = vmatprep.subr.bf16.mxu1 %v1201_v8  ;;  %v715_v43 = vld [vmem:[#allocation6 + $0x78] sm:$0xff]  ;;  %v655_v44 = vmul.f32 %v641_v29, %v625_v26  ;;  %v657_v45 = vmul.f32 %v649_v32, %v627_v31  ;;  %v654_v46 = vmul.f32 %v637_v34, %v624_v33  ;;  %v675_v47 = vrot.slane %v662_v30, %v644_v17  ;;  %v628_v48 = vld [vmem:[#allocation2 + $0x20] sm:$0xff]  ;;  %v630_v52 = vld [vmem:[#allocation2 + $0x30] sm:$0xff] }
 0x1a4   : > { %v656_v49 = vmul.f32 %v645_v39, %v626_v38  ;;  %v659_v50 = vmul.f32 %v641_v29, %v629_v40  ;;  %v661_v51 = vmul.f32 %v649_v32, %v631_v41  ;;  %v746_v54 = vld [vmem:[#allocation6 + $0x170] sm:$0xff]  ;;  %v747_v55 = vld [vmem:[#allocation6 + $0x178] sm:$0xff]  ;;  %v1179_v58 = vpack.c.bf16 %v715_v43, %v714_v42 }
 0x1a5   : > { %1172 = vmatpush3.bf16.msra.mxu0 %v1171_v18  ;;  %v685_v56 = vadd.f32 %v671_v35, %v655_v44  ;;  %v687_v57 = vadd.f32 %v679_v36, %v657_v45  ;;  %v684_v59 = vadd.f32 %v667_v37, %v654_v46  ;;  %v658_v61 = vmul.f32 %v637_v34, %v628_v48 }
 0x1a6   : > { %1204 = vmatpush3.bf16.msra.mxu1 %v1203_v19  ;;  %1174 = vmatprep.subr.bf16.mxu0 %v1173_v20  ;;  %v686_v60 = vadd.f32 %v675_v47, %v656_v49  ;;  %v689_v0 = vadd.f32 %v671_v35, %v659_v50  ;;  %v660_v1 = vmul.f32 %v645_v39, %v630_v52 }
 0x1a7   : > { %1206 = vmatprep.subr.bf16.mxu1 %v1205_v21  ;;  %v693_v62 = vmax.f32 %v685_v56, 0.0  ;;  %v695_v63 = vmax.f32 %v687_v57, 0.0  ;;  %v1211_v2 = vpack.c.bf16 %v747_v55, %v746_v54  ;;  %v691_v3 = vadd.f32 %v679_v36, %v661_v51 }
 0x1a8   : > { %v692_v4 = vmax.f32 %v684_v59, 0.0  ;;  %v688_v5 = vadd.f32 %v667_v37, %v658_v61  ;;  %v694_v6 = vmax.f32 %v686_v60, 0.0  ;;  %v697_v7 = vmax.f32 %v689_v0, 0.0 }
 0x1a9   : > { %1176 = vmatpush3.bf16.msra.mxu0 %v1175_v22  ;;  %828 = vmatprep.mubr.f32.mxu0 %v693_v62  ;;  %v690_v8 = vadd.f32 %v675_v47, %v660_v1  ;;  %v699_v9 = vmax.f32 %v691_v3, 0.0 }
 0x1aa   : > { %1208 = vmatpush3.bf16.msra.mxu1 %v1207_v23  ;;  %1178 = vmatprep.subr.bf16.mxu0 %v1177_v28  ;;  %v696_v10 = vmax.f32 %v688_v5, 0.0 }
 0x1ab   : > { %1210 = vmatprep.subr.bf16.mxu1 %v1209_v53  ;;  %903 = vmatprep.mubr.f32.mxu1 %v695_v63  ;;  %v698_v11 = vmax.f32 %v690_v8, 0.0 }
 0x1ad   : > { %1180 = vmatpush3.bf16.msra.mxu0 %v1179_v58 }
 0x1ae   : > { %1212 = vmatpush3.bf16.msra.mxu1 %v1211_v2 }
 0x1b0   : > { %829 = vmatmul.mubr.f32.vlgmr.msra.gmra.mrb[0].mxu0 %v692_v4 }
 0x1b1   : > { %904 = vmatmul.mubr.f32.vlgmr.msra.gmra.mrb[0].mxu1 %v694_v6  ;;  %833 = vmatprep.mubr.f32.mxu0 %v697_v7 }
 0x1b2   : > { %908 = vmatprep.mubr.f32.mxu1 %v699_v9 }
 0x1b4   : > { %834 = vmatmul.mubr.f32.gmra.mrb[2].mxu0 %v696_v10 }
 0x1b5   : > { %909 = vmatmul.mubr.f32.gmra.mrb[2].mxu1 %v698_v11 }
 0x283   : > { %v1105_v12 = vpop.f32.mrb[0].mxu0 }
 0x284   : > { %v1143_v13 = vpop.f32.mrb[0].mxu1  ;;  %v1106_v14 = vpop.f32.mrb[1].mxu0 }
 0x285   : > { %v1107_v15 = vadd.f32 %v1106_v14, %v1105_v12  ;;  %v1144_v16 = vpop.f32.mrb[1].mxu1 }
 0x286   : > { %v1145_v17 = vadd.f32 %v1144_v16, %v1143_v13 }
 0x287   : > { %v1108_v18 = vpop.f32.mrb[2].mxu0 }
 0x288   : > { %v906_v19 = vadd.f32 %v1145_v17, %v1107_v15  ;;  %v1146_v20 = vpop.f32.mrb[2].mxu1  ;;  %v1109_v21 = vpop.f32.mrb[3].mxu0 }
 0x289   : > { %v1110_v22 = vadd.f32 %v1109_v21, %v1108_v18  ;;  %v1147_v23 = vpop.f32.mrb[3].mxu1 }
 0x28a   : > { %914 = vst [vmem:[%s1652_s5] sm:$0xff] %v906_v19  ;;  %v1148_v24 = vadd.f32 %v1147_v23, %v1146_v20 }
 0x28c   : > { %v911_v25 = vadd.f32 %v1148_v24, %v1110_v22 }
 0x28e   : > { %915 = vst [vmem:[%s1652_s5 + $0x8] sm:$0xff] %v911_v25 }
 0x28f PF: > { %s19_s23 = sadd.s32 1, %s1391_s23   ;;  %s1668_s18 = smov %s1375_s19 }
 0x290   : > { %p16_p7 = scmp.ge.s32.totalorder %s19_s23, 6   ;;  %s1669_s19 = smov %s1379_s20 }
 0x291   : > { %s1670_s20 = smov %s1485_s6  ;;  %s1671_s21 = smov %s1387_s22 }
 0x292   : > { %s1672_s22 = smov %s1674_s25  ;;  %18 = sbr.rel (!%p16_p7) target bundleno = 5 (0x5), region = 149 }
 0x299   :  { %937 = vsyncpa [#allocation5], 1 }
 0x29a   :  { %939 = vsyncpa [#allocation5 + $0x1], 1 }
 0x29b   :  { %940 = vsyncpa [#allocation7], 1 }

</bundles_post_ra>
